<compile_context>
chip_gen: v7x
topology: tpu7x:2x2x1
jax: 0.10.0
libtpu: 0.0.40
codegen_flags: <defaults>
</compile_context>

<pallas_src>
import functools

import jax
import jax.numpy as jnp
from jax.experimental import pallas as pl
from jax.experimental.pallas import tpu as pltpu


def _conv_bn_relu_kernel(x_ref, w_ref, shift_ref, o_ref, *, kh, kw, h_out, w_out):
    """Fused (im2col-free) conv + BN-shift + ReLU for one image.

    x_ref:     (Hp, Wp, Cin)           f32, spatially padded activation (NHWC, one image)
    w_ref:     (Kh*Kw, Cin, Cout_pad)  bf16, BN-scale-folded conv weights, one slice per tap
    shift_ref: (1, Cout_pad)           f32,  beta - running_mean * scale
    o_ref:     (H*W, Cout_pad)         output block (lane-dense Cout)
    """
    cout_p = o_ref.shape[-1]
    acc = jnp.zeros((h_out * w_out, cout_p), jnp.float32)
    tap_idx = 0
    # Statically unrolled over the Kh*Kw taps: each tap is a shifted window of the
    # padded image already resident in VMEM -> one bf16 MXU matmul, f32 accumulate.
    for di in range(kh):
        for dj in range(kw):
            tap = x_ref[di:di + h_out, dj:dj + w_out, :]              # (H, W, Cin)
            tap = tap.reshape(h_out * w_out, tap.shape[-1])           # (H*W, Cin)
            acc = acc + jnp.dot(tap.astype(jnp.bfloat16), w_ref[tap_idx],
                                preferred_element_type=jnp.float32)
            tap_idx += 1
    y = acc + shift_ref[...]                  # BN shift (scale already folded into weights)
    o_ref[...] = jnp.maximum(y, 0.0).astype(o_ref.dtype)


@functools.partial(jax.jit, static_argnames=("eps", "padding"))
def basic_conv2d(x, weight, gamma, beta, running_mean, running_var,
                 eps=1e-3, padding=None):
    """x: (N, Cin, H, W); weight: (Cout, Cin, Kh, Kw) (PyTorch layouts). Returns NCHW f32.

    Inference-mode BatchNorm (running stats), stride 1.  `padding=None` means
    (kh//2, kw//2) ("same" for odd kernels); a (pad_h, pad_w) tuple is also accepted.
    """
    n, cin, h, w = x.shape
    cout, _, kh, kw = weight.shape
    if padding is None:
        pad_h, pad_w = kh // 2, kw // 2
    else:
        pad_h, pad_w = padding
    hp, wp = h + 2 * pad_h, w + 2 * pad_w
    h_out = hp - (kh - 1)
    w_out = wp - (kw - 1)
    m_out = h_out * w_out

    # ---- host-side glue (plain JAX; single cheap relayout, no im2col blow-up) ----
    # NCHW -> NHWC + spatial zero pad.
    x_nhwc = jnp.transpose(x, (0, 2, 3, 1))
    xp = jnp.pad(x_nhwc, ((0, 0), (pad_h, pad_h), (pad_w, pad_w), (0, 0)))
    xp = xp.astype(jnp.float32)

    # Fold BN scale into the conv weights; keep shift for the kernel epilogue.
    scale = gamma / jnp.sqrt(running_var + eps)                       # (Cout,)
    shift = beta - running_mean * scale                               # (Cout,)

    # Pad Cout to a multiple of 128 so the kernel's output stores are lane-dense.
    cout_p = 128 * pl.cdiv(cout, 128)
    # (Cout, Cin, Kh, Kw) -> (Kh*Kw, Cin, Cout_pad), BN scale folded, bf16 for the MXU.
    w_taps = jnp.transpose(weight * scale[:, None, None, None], (2, 3, 1, 0))
    w_taps = w_taps.reshape(kh * kw, cin, cout)
    w_taps = jnp.pad(w_taps, ((0, 0), (0, 0), (0, cout_p - cout))).astype(jnp.bfloat16)
    shift_p = jnp.pad(shift, (0, cout_p - cout)).reshape(1, cout_p).astype(jnp.float32)

    kernel = functools.partial(_conv_bn_relu_kernel,
                               kh=kh, kw=kw, h_out=h_out, w_out=w_out)

    # Explicit VMEM budget: double-buffered image block + resident weights/shift +
    # double-buffered output block + f32 accumulator, with headroom.
    bytes_needed = (2 * hp * wp * cin * 4                 # activation block x2
                    + 2 * kh * kw * cin * cout_p * 2      # weights x2 (resident)
                    + 2 * cout_p * 4                      # shift x2
                    + 2 * m_out * cout_p * 4              # output block x2
                    + m_out * cout_p * 4)                 # accumulator
    vmem_limit = int(min(max(4 * bytes_needed, 16 * 1024 * 1024), 48 * 1024 * 1024))

    cost = pl.CostEstimate(
        flops=2 * n * m_out * cin * kh * kw * cout_p,
        transcendentals=0,
        bytes_accessed=int(xp.size * 4 + w_taps.size * 2 + shift_p.size * 4
                           + n * m_out * cout_p * 4),
    )

    out_flat = pl.pallas_call(
        kernel,
        out_shape=jax.ShapeDtypeStruct((n, m_out, cout_p), jnp.float32),
        grid_spec=pltpu.PrefetchScalarGridSpec(
            num_scalar_prefetch=0,
            grid=(n,),
            in_specs=[
                pl.BlockSpec((None, hp, wp, cin), lambda i: (i, 0, 0, 0)),
                pl.BlockSpec((kh * kw, cin, cout_p), lambda i: (0, 0, 0)),
                pl.BlockSpec((1, cout_p), lambda i: (0, 0)),
            ],
            out_specs=pl.BlockSpec((None, m_out, cout_p), lambda i: (i, 0, 0)),
        ),
        compiler_params=pltpu.CompilerParams(
            dimension_semantics=("parallel",),
            vmem_limit_bytes=vmem_limit,
        ),
        cost_estimate=cost,
    )(xp, w_taps, shift_p)

    # (N, H*W, Cout_pad) -> (N, Cout, H, W).
    # TODO(synk): keep NHWC when the consumer allows it; this transpose is a pure
    # relayout pass a fused NHWC pipeline would not pay.
    out = out_flat.reshape(n, h_out, w_out, cout_p)[..., :cout]
    return jnp.transpose(out, (0, 3, 1, 2))


if __name__ == "__main__":
    key = jax.random.PRNGKey(0)
    k_x, k_w, k_g, k_b, k_m, k_v = jax.random.split(key, 6)

    N, Cin, H, W = 2, 4, 16, 16
    Cout, Kh, Kw = 8, 3, 3      # BasicConv2d(in_channels=4, out_channels=8, kernel_size=3, padding=1)

    x = jax.random.normal(k_x, (N, Cin, H, W), dtype=jnp.float32)
    weight = jax.random.normal(k_w, (Cout, Cin, Kh, Kw), dtype=jnp.float32) * 0.1
    gamma = jax.random.uniform(k_g, (Cout,), dtype=jnp.float32, minval=0.5, maxval=1.5)
    beta = jax.random.normal(k_b, (Cout,), dtype=jnp.float32) * 0.1
    running_mean = jax.random.normal(k_m, (Cout,), dtype=jnp.float32) * 0.1
    running_var = jax.random.uniform(k_v, (Cout,), dtype=jnp.float32, minval=0.5, maxval=1.5)

    out = basic_conv2d(x, weight, gamma, beta, running_mean, running_var, eps=1e-3)
    out = jax.block_until_ready(out)
    assert out.shape == (N, Cout, H, W)

    # Precision-matched reference: same bf16-rounded activations / scale-folded weights,
    # f32 products and accumulation (matches the kernel's bf16 MXU + f32 acc exactly up
    # to accumulation order).
    scale = gamma / jnp.sqrt(running_var + 1e-3)
    shift = beta - running_mean * scale
    x_q = x.astype(jnp.bfloat16).astype(jnp.float32)
    w_q = (weight * scale[:, None, None, None]).astype(jnp.bfloat16).astype(jnp.float32)
    y_q = jax.lax.conv_general_dilated(
        x_q, w_q, window_strides=(1, 1), padding="SAME",
        dimension_numbers=("NCHW", "OIHW", "NCHW"),
        precision=jax.lax.Precision.HIGHEST)
    ref = jnp.maximum(y_q + shift.reshape(1, -1, 1, 1), 0.0)
    assert jnp.allclose(out, ref, atol=2e-3, rtol=2e-3), "mismatch vs precision-matched reference"

    # Loose sanity check against the full-f32 module semantics (bf16 rounding only).
    y32 = jax.lax.conv_general_dilated(
        x, weight, window_strides=(1, 1), padding="SAME",
        dimension_numbers=("NCHW", "OIHW", "NCHW"),
        precision=jax.lax.Precision.HIGHEST)
    ref32 = jnp.maximum(y32 * scale.reshape(1, -1, 1, 1) + shift.reshape(1, -1, 1, 1), 0.0)
    assert float(jnp.max(jnp.abs(out - ref32))) < 0.1, "too far from f32 reference"

    print("KERNEL_OK")
</pallas_src>

<mosaic_0001>
module attributes {stable_mosaic.version = 11 : i64} {
  func.func @_conv_bn_relu_kernel(%arg0: i32, %arg1: memref<1x18x18x4xf32, #tpu.memory_space<vmem>>, %arg2: memref<9x4x128xbf16, #tpu.memory_space<vmem>>, %arg3: memref<1x128xf32, #tpu.memory_space<vmem>>, %arg4: memref<1x256x128xf32, #tpu.memory_space<vmem>>) attributes {dimension_semantics = [#tpu.dimension_semantics<parallel>], iteration_bounds = array<i64: 2>, scalar_prefetch = 0 : i64, scratch_operands = 0 : i64, tpu.core_type = #tpu.core_type<tc>, window_params = [{transform_indices = @transform_0, window_bounds = array<i64: 1, 18, 18, 4>}, {pipeline_mode = #tpu.pipeline_mode<synchronous>, transform_indices = @transform_1, window_bounds = array<i64: 9, 4, 128>}, {pipeline_mode = #tpu.pipeline_mode<synchronous>, transform_indices = @transform_2, window_bounds = array<i64: 1, 128>}, {transform_indices = @transform_3, window_bounds = array<i64: 1, 256, 128>}]} {
    %cst = arith.constant 0.000000e+00 : f32
    %0 = vector.broadcast %cst : f32 to vector<256x128xf32>
    %c0 = arith.constant 0 : index
    %c0_0 = arith.constant 0 : index
    %c0_1 = arith.constant 0 : index
    %c0_2 = arith.constant 0 : index
    %1 = vector.load %arg1[%c0, %c0_0, %c0_1, %c0_2] : memref<1x18x18x4xf32, #tpu.memory_space<vmem>>, vector<1x16x16x4xf32>
    %2 = vector.shape_cast %1 : vector<1x16x16x4xf32> to vector<16x16x4xf32>
    %3 = vector.shape_cast %2 : vector<16x16x4xf32> to vector<256x4xf32>
    %4 = arith.truncf %3 : vector<256x4xf32> to vector<256x4xbf16>
    %c0_3 = arith.constant 0 : index
    %c0_4 = arith.constant 0 : index
    %c0_5 = arith.constant 0 : index
    %5 = vector.load %arg2[%c0_3, %c0_4, %c0_5] : memref<9x4x128xbf16, #tpu.memory_space<vmem>>, vector<1x4x128xbf16>
    %6 = vector.shape_cast %5 : vector<1x4x128xbf16> to vector<4x128xbf16>
    %cst_6 = arith.constant dense<0.000000e+00> : vector<256x128xf32>
    %7 = tpu.matmul %4, %6, %cst_6 {dimension_numbers = #tpu.dot_dimension_numbers<[1], [0], [0], [1], [0, 0, 1, 1], [], []>} : vector<256x4xbf16>, vector<4x128xbf16>, vector<256x128xf32> -> vector<256x128xf32>
    %8 = arith.addf %0, %7 : vector<256x128xf32>
    %c0_7 = arith.constant 0 : index
    %c0_8 = arith.constant 0 : index
    %c1 = arith.constant 1 : index
    %c0_9 = arith.constant 0 : index
    %9 = vector.load %arg1[%c0_7, %c0_8, %c1, %c0_9] : memref<1x18x18x4xf32, #tpu.memory_space<vmem>>, vector<1x16x16x4xf32>
    %10 = vector.shape_cast %9 : vector<1x16x16x4xf32> to vector<16x16x4xf32>
    %11 = vector.shape_cast %10 : vector<16x16x4xf32> to vector<256x4xf32>
    %12 = arith.truncf %11 : vector<256x4xf32> to vector<256x4xbf16>
    %c1_10 = arith.constant 1 : index
    %c0_11 = arith.constant 0 : index
    %c0_12 = arith.constant 0 : index
    %13 = vector.load %arg2[%c1_10, %c0_11, %c0_12] : memref<9x4x128xbf16, #tpu.memory_space<vmem>>, vector<1x4x128xbf16>
    %14 = vector.shape_cast %13 : vector<1x4x128xbf16> to vector<4x128xbf16>
    %cst_13 = arith.constant dense<0.000000e+00> : vector<256x128xf32>
    %15 = tpu.matmul %12, %14, %cst_13 {dimension_numbers = #tpu.dot_dimension_numbers<[1], [0], [0], [1], [0, 0, 1, 1], [], []>} : vector<256x4xbf16>, vector<4x128xbf16>, vector<256x128xf32> -> vector<256x128xf32>
    %16 = arith.addf %8, %15 : vector<256x128xf32>
    %c0_14 = arith.constant 0 : index
    %c0_15 = arith.constant 0 : index
    %c2 = arith.constant 2 : index
    %c0_16 = arith.constant 0 : index
    %17 = vector.load %arg1[%c0_14, %c0_15, %c2, %c0_16] : memref<1x18x18x4xf32, #tpu.memory_space<vmem>>, vector<1x16x16x4xf32>
    %18 = vector.shape_cast %17 : vector<1x16x16x4xf32> to vector<16x16x4xf32>
    %19 = vector.shape_cast %18 : vector<16x16x4xf32> to vector<256x4xf32>
    %20 = arith.truncf %19 : vector<256x4xf32> to vector<256x4xbf16>
    %c2_17 = arith.constant 2 : index
    %c0_18 = arith.constant 0 : index
    %c0_19 = arith.constant 0 : index
    %21 = vector.load %arg2[%c2_17, %c0_18, %c0_19] : memref<9x4x128xbf16, #tpu.memory_space<vmem>>, vector<1x4x128xbf16>
    %22 = vector.shape_cast %21 : vector<1x4x128xbf16> to vector<4x128xbf16>
    %cst_20 = arith.constant dense<0.000000e+00> : vector<256x128xf32>
    %23 = tpu.matmul %20, %22, %cst_20 {dimension_numbers = #tpu.dot_dimension_numbers<[1], [0], [0], [1], [0, 0, 1, 1], [], []>} : vector<256x4xbf16>, vector<4x128xbf16>, vector<256x128xf32> -> vector<256x128xf32>
    %24 = arith.addf %16, %23 : vector<256x128xf32>
    %c0_21 = arith.constant 0 : index
    %c1_22 = arith.constant 1 : index
    %c0_23 = arith.constant 0 : index
    %c0_24 = arith.constant 0 : index
    %25 = vector.load %arg1[%c0_21, %c1_22, %c0_23, %c0_24] : memref<1x18x18x4xf32, #tpu.memory_space<vmem>>, vector<1x16x16x4xf32>
    %26 = vector.shape_cast %25 : vector<1x16x16x4xf32> to vector<16x16x4xf32>
    %27 = vector.shape_cast %26 : vector<16x16x4xf32> to vector<256x4xf32>
    %28 = arith.truncf %27 : vector<256x4xf32> to vector<256x4xbf16>
    %c3 = arith.constant 3 : index
    %c0_25 = arith.constant 0 : index
    %c0_26 = arith.constant 0 : index
    %29 = vector.load %arg2[%c3, %c0_25, %c0_26] : memref<9x4x128xbf16, #tpu.memory_space<vmem>>, vector<1x4x128xbf16>
    %30 = vector.shape_cast %29 : vector<1x4x128xbf16> to vector<4x128xbf16>
    %cst_27 = arith.constant dense<0.000000e+00> : vector<256x128xf32>
    %31 = tpu.matmul %28, %30, %cst_27 {dimension_numbers = #tpu.dot_dimension_numbers<[1], [0], [0], [1], [0, 0, 1, 1], [], []>} : vector<256x4xbf16>, vector<4x128xbf16>, vector<256x128xf32> -> vector<256x128xf32>
    %32 = arith.addf %24, %31 : vector<256x128xf32>
    %c0_28 = arith.constant 0 : index
    %c1_29 = arith.constant 1 : index
    %c1_30 = arith.constant 1 : index
    %c0_31 = arith.constant 0 : index
    %33 = vector.load %arg1[%c0_28, %c1_29, %c1_30, %c0_31] : memref<1x18x18x4xf32, #tpu.memory_space<vmem>>, vector<1x16x16x4xf32>
    %34 = vector.shape_cast %33 : vector<1x16x16x4xf32> to vector<16x16x4xf32>
    %35 = vector.shape_cast %34 : vector<16x16x4xf32> to vector<256x4xf32>
    %36 = arith.truncf %35 : vector<256x4xf32> to vector<256x4xbf16>
    %c4 = arith.constant 4 : index
    %c0_32 = arith.constant 0 : index
    %c0_33 = arith.constant 0 : index
    %37 = vector.load %arg2[%c4, %c0_32, %c0_33] : memref<9x4x128xbf16, #tpu.memory_space<vmem>>, vector<1x4x128xbf16>
    %38 = vector.shape_cast %37 : vector<1x4x128xbf16> to vector<4x128xbf16>
    %cst_34 = arith.constant dense<0.000000e+00> : vector<256x128xf32>
    %39 = tpu.matmul %36, %38, %cst_34 {dimension_numbers = #tpu.dot_dimension_numbers<[1], [0], [0], [1], [0, 0, 1, 1], [], []>} : vector<256x4xbf16>, vector<4x128xbf16>, vector<256x128xf32> -> vector<256x128xf32>
    %40 = arith.addf %32, %39 : vector<256x128xf32>
    %c0_35 = arith.constant 0 : index
    %c1_36 = arith.constant 1 : index
    %c2_37 = arith.constant 2 : index
    %c0_38 = arith.constant 0 : index
    %41 = vector.load %arg1[%c0_35, %c1_36, %c2_37, %c0_38] : memref<1x18x18x4xf32, #tpu.memory_space<vmem>>, vector<1x16x16x4xf32>
    %42 = vector.shape_cast %41 : vector<1x16x16x4xf32> to vector<16x16x4xf32>
    %43 = vector.shape_cast %42 : vector<16x16x4xf32> to vector<256x4xf32>
    %44 = arith.truncf %43 : vector<256x4xf32> to vector<256x4xbf16>
    %c5 = arith.constant 5 : index
    %c0_39 = arith.constant 0 : index
    %c0_40 = arith.constant 0 : index
    %45 = vector.load %arg2[%c5, %c0_39, %c0_40] : memref<9x4x128xbf16, #tpu.memory_space<vmem>>, vector<1x4x128xbf16>
    %46 = vector.shape_cast %45 : vector<1x4x128xbf16> to vector<4x128xbf16>
    %cst_41 = arith.constant dense<0.000000e+00> : vector<256x128xf32>
    %47 = tpu.matmul %44, %46, %cst_41 {dimension_numbers = #tpu.dot_dimension_numbers<[1], [0], [0], [1], [0, 0, 1, 1], [], []>} : vector<256x4xbf16>, vector<4x128xbf16>, vector<256x128xf32> -> vector<256x128xf32>
    %48 = arith.addf %40, %47 : vector<256x128xf32>
    %c0_42 = arith.constant 0 : index
    %c2_43 = arith.constant 2 : index
    %c0_44 = arith.constant 0 : index
    %c0_45 = arith.constant 0 : index
    %49 = vector.load %arg1[%c0_42, %c2_43, %c0_44, %c0_45] : memref<1x18x18x4xf32, #tpu.memory_space<vmem>>, vector<1x16x16x4xf32>
    %50 = vector.shape_cast %49 : vector<1x16x16x4xf32> to vector<16x16x4xf32>
    %51 = vector.shape_cast %50 : vector<16x16x4xf32> to vector<256x4xf32>
    %52 = arith.truncf %51 : vector<256x4xf32> to vector<256x4xbf16>
    %c6 = arith.constant 6 : index
    %c0_46 = arith.constant 0 : index
    %c0_47 = arith.constant 0 : index
    %53 = vector.load %arg2[%c6, %c0_46, %c0_47] : memref<9x4x128xbf16, #tpu.memory_space<vmem>>, vector<1x4x128xbf16>
    %54 = vector.shape_cast %53 : vector<1x4x128xbf16> to vector<4x128xbf16>
    %cst_48 = arith.constant dense<0.000000e+00> : vector<256x128xf32>
    %55 = tpu.matmul %52, %54, %cst_48 {dimension_numbers = #tpu.dot_dimension_numbers<[1], [0], [0], [1], [0, 0, 1, 1], [], []>} : vector<256x4xbf16>, vector<4x128xbf16>, vector<256x128xf32> -> vector<256x128xf32>
    %56 = arith.addf %48, %55 : vector<256x128xf32>
    %c0_49 = arith.constant 0 : index
    %c2_50 = arith.constant 2 : index
    %c1_51 = arith.constant 1 : index
    %c0_52 = arith.constant 0 : index
    %57 = vector.load %arg1[%c0_49, %c2_50, %c1_51, %c0_52] : memref<1x18x18x4xf32, #tpu.memory_space<vmem>>, vector<1x16x16x4xf32>
    %58 = vector.shape_cast %57 : vector<1x16x16x4xf32> to vector<16x16x4xf32>
    %59 = vector.shape_cast %58 : vector<16x16x4xf32> to vector<256x4xf32>
    %60 = arith.truncf %59 : vector<256x4xf32> to vector<256x4xbf16>
    %c7 = arith.constant 7 : index
    %c0_53 = arith.constant 0 : index
    %c0_54 = arith.constant 0 : index
    %61 = vector.load %arg2[%c7, %c0_53, %c0_54] : memref<9x4x128xbf16, #tpu.memory_space<vmem>>, vector<1x4x128xbf16>
    %62 = vector.shape_cast %61 : vector<1x4x128xbf16> to vector<4x128xbf16>
    %cst_55 = arith.constant dense<0.000000e+00> : vector<256x128xf32>
    %63 = tpu.matmul %60, %62, %cst_55 {dimension_numbers = #tpu.dot_dimension_numbers<[1], [0], [0], [1], [0, 0, 1, 1], [], []>} : vector<256x4xbf16>, vector<4x128xbf16>, vector<256x128xf32> -> vector<256x128xf32>
    %64 = arith.addf %56, %63 : vector<256x128xf32>
    %c0_56 = arith.constant 0 : index
    %c2_57 = arith.constant 2 : index
    %c2_58 = arith.constant 2 : index
    %c0_59 = arith.constant 0 : index
    %65 = vector.load %arg1[%c0_56, %c2_57, %c2_58, %c0_59] : memref<1x18x18x4xf32, #tpu.memory_space<vmem>>, vector<1x16x16x4xf32>
    %66 = vector.shape_cast %65 : vector<1x16x16x4xf32> to vector<16x16x4xf32>
    %67 = vector.shape_cast %66 : vector<16x16x4xf32> to vector<256x4xf32>
    %68 = arith.truncf %67 : vector<256x4xf32> to vector<256x4xbf16>
    %c8 = arith.constant 8 : index
    %c0_60 = arith.constant 0 : index
    %c0_61 = arith.constant 0 : index
    %69 = vector.load %arg2[%c8, %c0_60, %c0_61] : memref<9x4x128xbf16, #tpu.memory_space<vmem>>, vector<1x4x128xbf16>
    %70 = vector.shape_cast %69 : vector<1x4x128xbf16> to vector<4x128xbf16>
    %cst_62 = arith.constant dense<0.000000e+00> : vector<256x128xf32>
    %71 = tpu.matmul %68, %70, %cst_62 {dimension_numbers = #tpu.dot_dimension_numbers<[1], [0], [0], [1], [0, 0, 1, 1], [], []>} : vector<256x4xbf16>, vector<4x128xbf16>, vector<256x128xf32> -> vector<256x128xf32>
    %72 = arith.addf %64, %71 : vector<256x128xf32>
    %c0_63 = arith.constant 0 : index
    %c0_64 = arith.constant 0 : index
    %73 = vector.load %arg3[%c0_63, %c0_64] : memref<1x128xf32, #tpu.memory_space<vmem>>, vector<1x128xf32>
    %74 = vector.broadcast %73 : vector<1x128xf32> to vector<256x128xf32>
    %75 = arith.addf %72, %74 : vector<256x128xf32>
    %cst_65 = arith.constant 0.000000e+00 : f32
    %76 = vector.broadcast %cst_65 : f32 to vector<256x128xf32>
    %77 = arith.maximumf %75, %76 : vector<256x128xf32>
    %c0_66 = arith.constant 0 : index
    %c0_67 = arith.constant 0 : index
    %c0_68 = arith.constant 0 : index
    %78 = vector.load %arg4[%c0_66, %c0_67, %c0_68] : memref<1x256x128xf32, #tpu.memory_space<vmem>>, vector<1x256x128xf32>
    %79 = vector.shape_cast %78 : vector<1x256x128xf32> to vector<256x128xf32>
    %80 = vector.shape_cast %77 : vector<256x128xf32> to vector<1x256x128xf32>
    tpu.vector_store %arg4[%c0_66, %c0_67, %c0_68], %80 {strides = array<i32>} : memref<1x256x128xf32, #tpu.memory_space<vmem>>, vector<1x256x128xf32>,
    return
  }
  func.func @transform_0(%arg0: i32) -> (i32, i32, i32, i32) {
    %c0_i32 = arith.constant 0 : i32
    %c0_i32_0 = arith.constant 0 : i32
    %c0_i32_1 = arith.constant 0 : i32
    %c0_i32_2 = arith.constant 0 : i32
    return %arg0, %c0_i32, %c0_i32_0, %c0_i32_1 : i32, i32, i32, i32
  }
  func.func @transform_1(%arg0: i32) -> (i32, i32, i32) {
    %c0_i32 = arith.constant 0 : i32
    %c0_i32_0 = arith.constant 0 : i32
    %c0_i32_1 = arith.constant 0 : i32
    %c0_i32_2 = arith.constant 0 : i32
    return %c0_i32, %c0_i32_0, %c0_i32_1 : i32, i32, i32
  }
  func.func @transform_2(%arg0: i32) -> (i32, i32) {
    %c0_i32 = arith.constant 0 : i32
    %c0_i32_0 = arith.constant 0 : i32
    %c0_i32_1 = arith.constant 0 : i32
    return %c0_i32, %c0_i32_0 : i32, i32
  }
  func.func @transform_3(%arg0: i32) -> (i32, i32, i32) {
    %c0_i32 = arith.constant 0 : i32
    %c0_i32_0 = arith.constant 0 : i32
    %c0_i32_1 = arith.constant 0 : i32
    return %arg0, %c0_i32, %c0_i32_0 : i32, i32, i32
  }
}

</mosaic_0001>

<bundles_post_ra>
// kernel: basic_conv2d.1
= control target key start
LH: loop header
LB: loop body
LE: loop exit
PB: predicated region body
PF: predicated region fallthrough
CT: control target
= control target key end

     0   :  { %s4035_s12 = smov 0   ;;  %s4686_s0 = inlined_call_operand.vmem [shape: f32[2,18,18,4], index: 0, kind: input, shape index: {}]   ;;  %s4687_s1 = inlined_call_operand.vmem [shape: bf16[9,4,128], index: 1, kind: input, shape index: {}]   ;;  %s4688_s2 = inlined_call_operand.vmem [shape: f32[1,128], index: 2, kind: input, shape index: {}]   ;;  %s4689_s3 = inlined_call_operand.vmem [shape: f32[2,256,128], index: 3, kind: output, shape index: {}]  }
   0x1 LB: > { %s2915_s13 = sadd.s32 4294967295, %s4013_s12   ;;  %p2919_p0 = scmp.ge.s32.totalorder %s4013_s12, 1  ;;  %s4013_s12 = sphi %s4035_s12, %s13_s12  }
   0x2   : > { %p137_p1 = scmp.lt.s32.totalorder %s4013_s12, 3 }
   0x4   : > { %p138_p2 = pnand %p2919_p0, %p137_p1 }
   0x5   : > { %v2923_v0 = vld [vmem:[%s4687_s1 + $0x2] sm:$0x3] (!%p138_p2)  ;;  %vm320_vm0 = vcmask (!%p138_p2), 1041408   ;;  %v4049_v1 = vld [vmem:[%s4687_s1 + $0x8] sm:$0x3] (!%p138_p2)  ;;  %p161_p3 = scmp.lt.s32.totalorder (!%p138_p2), %s2915_s13, 1 }
   0x6   : > { %141 = sbr.rel (%p138_p2) target bundleno = 524 (0x20c), region = 32  ;;  %3988 = vmatprep.subr.msk.bf16.mxu1 (!%p138_p2), %vm320_vm0, %v2923_v0  ;;  %3992 = vmatprep.subr.msk.bf16.mxu0 (!%p138_p2), %vm320_vm0, %v4049_v1  ;;  %v322_v2 = vsel (!%p138_p2), %vm320_vm0, %v2923_v0, 0  ;;  %v4057_v3 = vsel (!%p138_p2), %vm320_vm0, %v4049_v1, 0  ;;  %v220_v4 = vld [vmem:[%s4687_s1] sm:$0x3] (!%p138_p2)  ;;  %vm271_vm1 = vcmask (!%p138_p2), 31744  }
   0x7   : > { %3425 = vmatpush3.bf16.msra.mxu1 (!%p138_p2), %v322_v2  ;;  %3561 = vmatpush3.bf16.msra.mxu0 (!%p138_p2), %v4057_v3  ;;  %v3103_v5 = vld [vmem:[%s4687_s1 + $0xa] sm:$0x3] (!%p138_p2)  ;;  %v534_v14 = vsel (!%p138_p2), %vm320_vm0, %v220_v4, 0  ;;  %v3152_v20 = vld [vmem:[%s4687_s1 + $0xc] sm:$0x3] (!%p138_p2) }
   0x8   : > { %3989 = vmatprep.subr.msk.bf16.mxu1 (!%p138_p2), %vm320_vm0, %v220_v4  ;;  %3994 = vmatprep.subr.msk.bf16.mxu0 (!%p138_p2), %vm320_vm0, %v3103_v5  ;;  %v1679_v18 = vsel (!%p138_p2), %vm320_vm0, %v3103_v5, 0  ;;  %v4101_v21 = vld [vmem:[%s4687_s1 + $0x4] sm:$0x3] (!%p138_p2)  ;;  %v1974_v52 = vsel (!%p138_p2), %vm320_vm0, %v3152_v20, 0  ;;  %v4180_v53 = vld [vmem:[%s4687_s1 + $0xe] sm:$0x3] (!%p138_p2) }
   0xd   : > { %s4691_s13 = smov (!%p161_p3, %s2915_s13), 1 }
   0xe   : > { %s3998_s22 = smul.u32 432, %s4691_s13  ;;  %s3270_s11 = sshll.u32 %s4691_s13, 8 }
   0xf   : > { %s4614_s16 = scalar_lea.vmem %s4689_s3, %s3270_s11 }
  0x10   : > { %s4074_s25 = scalar_lea.vmem %s4686_s0, %s3998_s22 }
  0x11   : > { %v221_v6 = vld [vmem:[%s4074_s25 + $0x1] sm:$0xff]  ;;  %v222_v7 = vld [vmem:[%s4074_s25 + $0x9] sm:$0xff]  ;;  %v3022_v8 = vld [vmem:[%s4074_s25 + $0x19] sm:$0xff] }
  0x12   : > { %v253_v9 = vpack.c.bf16 %v222_v7, %v221_v6  ;;  %v3023_v10 = vld [vmem:[%s4074_s25 + $0x21] sm:$0xff]  ;;  %v3024_v11 = vld [vmem:[%s4074_s25 + $0x31] sm:$0xff]  ;;  %v3025_v12 = vld [vmem:[%s4074_s25 + $0x39] sm:$0xff] }
  0x13   : > { %v1318_v13 = vpack.c.bf16 %v3023_v10, %v3022_v8  ;;  %v4083_v15 = vpack.c.bf16 %v3025_v12, %v3024_v11  ;;  %v3026_v16 = vld [vmem:[%s4074_s25 + $0x49] sm:$0xff]  ;;  %v3027_v17 = vld [vmem:[%s4074_s25 + $0x51] sm:$0xff]  ;;  %v3028_v22 = vld [vmem:[%s4074_s25 + $0x61] sm:$0xff] }
  0x14   : > { %3426 = vmatprep.mubr.msk.bf16.mxu1 %vm271_vm1, %v253_v9  ;;  %v4089_v19 = vpack.c.bf16 %v3027_v17, %v3026_v16  ;;  %v3029_v23 = vld [vmem:[%s4074_s25 + $0x69] sm:$0xff]  ;;  %v3030_v24 = vld [vmem:[%s4074_s25 + $0x79] sm:$0xff]  ;;  %v3031_v25 = vld [vmem:[%s4074_s25 + $0x81] sm:$0xff] }
  0x15   : > { %3562 = vmatprep.mubr.msk.bf16.mxu0 %vm271_vm1, %v1318_v13  ;;  %3427 = vmatmul.mubr.msk.bf16.vlgmr.msra.gmra.mrb[0].mxu1 %vm271_vm1, %v1318_v13  ;;  %v4114_v26 = vpack.c.bf16 %v3029_v23, %v3028_v22  ;;  %v4116_v27 = vpack.c.bf16 %v3031_v25, %v3030_v24  ;;  %v3032_v28 = vld [vmem:[%s4074_s25 + $0x91] sm:$0xff]  ;;  %v3033_v29 = vld [vmem:[%s4074_s25 + $0x99] sm:$0xff]  ;;  %v3034_v30 = vld [vmem:[%s4074_s25 + $0xa9] sm:$0xff] }
  0x16   : > { %3459 = vmatpush3.bf16.msra.mxu1 %v534_v14  ;;  %3563 = vmatmul.mubr.msk.bf16.vlgmr.msra.gmra.mrb[0].mxu0 %vm271_vm1, %v4083_v15  ;;  %v3035_v31 = vld [vmem:[%s4074_s25 + $0xb1] sm:$0xff]  ;;  %v4130_v32 = vpack.c.bf16 %v3033_v29, %v3032_v28  ;;  %v3036_v34 = vld [vmem:[%s4074_s25 + $0xc1] sm:$0xff]  ;;  %v3037_v35 = vld [vmem:[%s4074_s25 + $0xc9] sm:$0xff] }
  0x17   : > { %3595 = vmatpush3.bf16.msra.mxu0 %v1679_v18  ;;  %3430 = vmatprep.mubr.msk.bf16.mxu1 %vm271_vm1, %v4083_v15  ;;  %v4132_v33 = vpack.c.bf16 %v3035_v31, %v3034_v30  ;;  %v3071_v36 = vld [vmem:[%s4074_s25 + $0x1a] sm:$0xff]  ;;  %v3072_v37 = vld [vmem:[%s4074_s25 + $0x22] sm:$0xff]  ;;  %v4146_v38 = vpack.c.bf16 %v3037_v35, %v3036_v34  ;;  %v3073_v42 = vld [vmem:[%s4074_s25 + $0x32] sm:$0xff] }
  0x18   : > { %3566 = vmatprep.mubr.msk.bf16.mxu0 %vm271_vm1, %v4089_v19  ;;  %3995 = vmatprep.subr.msk.bf16.mxu0 %vm320_vm0, %v3152_v20  ;;  %v4148_v39 = vpack.c.bf16 %v3072_v37, %v3071_v36  ;;  %v239_v40 = vld [vmem:[%s4074_s25 + $0xd9] sm:$0xff]  ;;  %v240_v41 = vld [vmem:[%s4074_s25 + $0xe1] sm:$0xff]  ;;  %v241_v44 = vld [vmem:[%s4074_s25 + $0xf1] sm:$0xff] }
  0x19   : > { %3990 = vmatprep.subr.msk.bf16.mxu1 %vm320_vm0, %v4101_v21  ;;  %v3074_v43 = vld [vmem:[%s4074_s25 + $0x3a] sm:$0xff]  ;;  %v3075_v46 = vld [vmem:[%s4074_s25 + $0x4a] sm:$0xff]  ;;  %v3076_v47 = vld [vmem:[%s4074_s25 + $0x52] sm:$0xff]  ;;  %v4166_v48 = vpack.c.bf16 %v240_v41, %v239_v40 }
  0x1a   : > { %v242_v45 = vld [vmem:[%s4074_s25 + $0xf9] sm:$0xff]  ;;  %v4168_v49 = vpack.c.bf16 %v3074_v43, %v3073_v42  ;;  %v4172_v51 = vpack.c.bf16 %v3076_v47, %v3075_v46  ;;  %v243_v54 = vld [vmem:[%s4074_s25 + $0x109] sm:$0xff]  ;;  %v244_v55 = vld [vmem:[%s4074_s25 + $0x111] sm:$0xff]  ;;  %v796_v47 = vsel %vm320_vm0, %v4101_v21, 0 }
  0x1b   : > { %v4170_v50 = vpack.c.bf16 %v242_v45, %v241_v44  ;;  %v3077_v56 = vld [vmem:[%s4074_s25 + $0x62] sm:$0xff]  ;;  %v3078_v57 = vld [vmem:[%s4074_s25 + $0x6a] sm:$0xff]  ;;  %v3079_v60 = vld [vmem:[%s4074_s25 + $0x7a] sm:$0xff]  ;;  %v4198_v62 = vpack.c.bf16 %v244_v55, %v243_v54 }
  0x1c   : > { %v245_v58 = vld [vmem:[%s4074_s25 + $0x121] sm:$0xff]  ;;  %v246_v59 = vld [vmem:[%s4074_s25 + $0x129] sm:$0xff]  ;;  %v4200_v63 = vpack.c.bf16 %v3078_v57, %v3077_v56  ;;  %v247_v4 = vld [vmem:[%s4074_s25 + $0x139] sm:$0xff] }
  0x1d   : > { %3431 = vmatmul.mubr.msk.bf16.gmra.mrb[4].mxu1 %vm271_vm1, %v4089_v19  ;;  %v3080_v61 = vld [vmem:[%s4074_s25 + $0x82] sm:$0xff]  ;;  %v4202_v0 = vpack.c.bf16 %v246_v59, %v245_v58  ;;  %v3081_v6 = vld [vmem:[%s4074_s25 + $0x92] sm:$0xff]  ;;  %v3082_v7 = vld [vmem:[%s4074_s25 + $0x9a] sm:$0xff] }
  0x1e   : > { %3567 = vmatmul.mubr.msk.bf16.gmra.mrb[4].mxu0 %vm271_vm1, %v4114_v26  ;;  %3434 = vmatprep.mubr.msk.bf16.mxu1 %vm271_vm1, %v4114_v26  ;;  %v4204_v2 = vpack.c.bf16 %v3080_v61, %v3079_v60  ;;  %v248_v5 = vld [vmem:[%s4074_s25 + $0x141] sm:$0xff]  ;;  %v249_v8 = vld [vmem:[%s4074_s25 + $0x151] sm:$0xff]  ;;  %v250_v9 = vld [vmem:[%s4074_s25 + $0x159] sm:$0xff]  ;;  %v4224_v13 = vpack.c.bf16 %v3082_v7, %v3081_v6 }
  0x1f   : > { %3570 = vmatprep.mubr.msk.bf16.mxu0 %vm271_vm1, %v4116_v27  ;;  %v3083_v10 = vld [vmem:[%s4074_s25 + $0xaa] sm:$0xff]  ;;  %v3084_v11 = vld [vmem:[%s4074_s25 + $0xb2] sm:$0xff]  ;;  %v4222_v12 = vpack.c.bf16 %v248_v5, %v247_v4  ;;  %v4226_v14 = vpack.c.bf16 %v250_v9, %v249_v8  ;;  %v3085_v20 = vld [vmem:[%s4074_s25 + $0xc2] sm:$0xff] }
  0x20   : > { %v4228_v16 = vpack.c.bf16 %v3084_v11, %v3083_v10  ;;  %v251_v17 = vld [vmem:[%s4074_s25 + $0x169] sm:$0xff]  ;;  %v252_v18 = vld [vmem:[%s4074_s25 + $0x171] sm:$0xff]  ;;  %v172_v23 = vld [vmem:[%s4074_s25] sm:$0xff] }
  0x21   : > { %v3086_v22 = vld [vmem:[%s4074_s25 + $0xca] sm:$0xff]  ;;  %v3087_v25 = vld [vmem:[%s4074_s25 + $0xda] sm:$0xff]  ;;  %v3088_v28 = vld [vmem:[%s4074_s25 + $0xe2] sm:$0xff]  ;;  %v4246_v29 = vpack.c.bf16 %v252_v18, %v251_v17 }
  0x22   : > { %v173_v24 = vld [vmem:[%s4074_s25 + $0x8] sm:$0xff]  ;;  %v4248_v30 = vpack.c.bf16 %v3086_v22, %v3085_v20  ;;  %v4250_v34 = vpack.c.bf16 %v3088_v28, %v3087_v25  ;;  %v174_v35 = vld [vmem:[%s4074_s25 + $0x18] sm:$0xff]  ;;  %v175_v36 = vld [vmem:[%s4074_s25 + $0x20] sm:$0xff] }
  0x23   : > { %v204_v31 = vpack.c.bf16 %v173_v24, %v172_v23  ;;  %v3089_v37 = vld [vmem:[%s4074_s25 + $0xf2] sm:$0xff]  ;;  %v3090_v40 = vld [vmem:[%s4074_s25 + $0xfa] sm:$0xff]  ;;  %v3091_v43 = vld [vmem:[%s4074_s25 + $0x10a] sm:$0xff]  ;;  %v4267_v45 = vpack.c.bf16 %v175_v36, %v174_v35 }
  0x24   : > { %v176_v41 = vld [vmem:[%s4074_s25 + $0x30] sm:$0xff]  ;;  %v177_v42 = vld [vmem:[%s4074_s25 + $0x38] sm:$0xff]  ;;  %v4269_v46 = vpack.c.bf16 %v3090_v40, %v3089_v37  ;;  %v4282_v55 = vld [vmem:[%s4687_s1 + $0x6] sm:$0x3] }
  0x25   : > { %3435 = vmatmul.mubr.msk.bf16.gmra.mrb[8].mxu1 %vm271_vm1, %v4116_v27  ;;  %v3092_v44 = vld [vmem:[%s4074_s25 + $0x112] sm:$0xff]  ;;  %v178_v56 = vld [vmem:[%s4074_s25 + $0x48] sm:$0xff]  ;;  %v180_v59 = vld [vmem:[%s4074_s25 + $0x60] sm:$0xff] }
  0x26   : > { %3571 = vmatmul.mubr.msk.bf16.gmra.mrb[8].mxu0 %vm271_vm1, %v4130_v32  ;;  %3438 = vmatprep.mubr.msk.bf16.mxu1 %vm271_vm1, %v4130_v32  ;;  %v4275_v54 = vpack.c.bf16 %v3092_v44, %v3091_v43  ;;  %v179_v57 = vld [vmem:[%s4074_s25 + $0x50] sm:$0xff]  ;;  %v3093_v21 = vld [vmem:[%s4074_s25 + $0x122] sm:$0xff]  ;;  %v3095_v61 = vld [vmem:[%s4074_s25 + $0x13a] sm:$0xff] }
  0x27   : > { %3574 = vmatprep.mubr.msk.bf16.mxu0 %vm271_vm1, %v4132_v33  ;;  %v3094_v58 = vld [vmem:[%s4074_s25 + $0x12a] sm:$0xff]  ;;  %v3096_v4 = vld [vmem:[%s4074_s25 + $0x142] sm:$0xff]  ;;  %v4300_v5 = vpack.c.bf16 %v179_v57, %v178_v56  ;;  %v182_v9 = vld [vmem:[%s4074_s25 + $0x78] sm:$0xff] }
  0x28   : > { %v181_v60 = vld [vmem:[%s4074_s25 + $0x68] sm:$0xff]  ;;  %v4302_v6 = vpack.c.bf16 %v3094_v58, %v3093_v21  ;;  %v4306_v8 = vpack.c.bf16 %v3096_v4, %v3095_v61  ;;  %v183_v10 = vld [vmem:[%s4074_s25 + $0x80] sm:$0xff]  ;;  %v3097_v11 = vld [vmem:[%s4074_s25 + $0x152] sm:$0xff]  ;;  %v2268_v61 = vsel %vm320_vm0, %v4180_v53, 0 }
  0x29   : > { %v4304_v7 = vpack.c.bf16 %v181_v60, %v180_v59  ;;  %v3098_v17 = vld [vmem:[%s4074_s25 + $0x15a] sm:$0xff]  ;;  %v184_v18 = vld [vmem:[%s4074_s25 + $0x90] sm:$0xff]  ;;  %v4324_v24 = vpack.c.bf16 %v183_v10, %v182_v9  ;;  %v186_v35 = vld [vmem:[%s4074_s25 + $0xa8] sm:$0xff] }
  0x2a   : > { %v185_v20 = vld [vmem:[%s4074_s25 + $0x98] sm:$0xff]  ;;  %v3099_v22 = vld [vmem:[%s4074_s25 + $0x16a] sm:$0xff]  ;;  %v4326_v25 = vpack.c.bf16 %v3098_v17, %v3097_v11  ;;  %v3101_v37 = vld [vmem:[%s4074_s25 + $0x182] sm:$0xff] }
  0x2b   : > { %v3100_v23 = vld [vmem:[%s4074_s25 + $0x172] sm:$0xff]  ;;  %v4328_v28 = vpack.c.bf16 %v185_v20, %v184_v18  ;;  %v3102_v40 = vld [vmem:[%s4074_s25 + $0x18a] sm:$0xff]  ;;  %v191_v57 = vld [vmem:[%s4074_s25 + $0xe0] sm:$0xff] }
  0x2c   : > { %v187_v36 = vld [vmem:[%s4074_s25 + $0xb0] sm:$0xff]  ;;  %v4348_v44 = vpack.c.bf16 %v3102_v40, %v3101_v37  ;;  %v190_v56 = vld [vmem:[%s4074_s25 + $0xd8] sm:$0xff]  ;;  %v194_v9 = vld [vmem:[%s4074_s25 + $0x108] sm:$0xff] }
  0x2d   : > { %3439 = vmatmul.mubr.msk.bf16.gmra.mrb[12].mxu1 %vm271_vm1, %v4132_v33  ;;  %v4346_v43 = vpack.c.bf16 %v187_v36, %v186_v35  ;;  %v192_v21 = vld [vmem:[%s4074_s25 + $0xf0] sm:$0xff]  ;;  %v193_v58 = vld [vmem:[%s4074_s25 + $0xf8] sm:$0xff]  ;;  %v4364_v59 = vpack.c.bf16 %v191_v57, %v190_v56  ;;  %v197_v11 = vld [vmem:[%s4074_s25 + $0x128] sm:$0xff] }
  0x2e   : > { %3575 = vmatmul.mubr.msk.bf16.gmra.mrb[12].mxu0 %vm271_vm1, %v4146_v38  ;;  %3442 = vmatprep.mubr.msk.bf16.mxu1 %vm271_vm1, %v4146_v38  ;;  %v4366_v60 = vpack.c.bf16 %v193_v58, %v192_v21  ;;  %v3250_v4 = vld [vmem:[%s4687_s1 + $0x10] sm:$0x3]  ;;  %v198_v20 = vld [vmem:[%s4074_s25 + $0x138] sm:$0xff]  ;;  %v202_v40 = vld [vmem:[%s4074_s25 + $0x168] sm:$0xff]  ;;  %v1091_v58 = vsel %vm320_vm0, %v4282_v55, 0 }
  0x2f   : > { %3596 = vmatprep.mubr.msk.bf16.mxu0 %vm271_vm1, %v4148_v39  ;;  %v195_v10 = vld [vmem:[%s4074_s25 + $0x110] sm:$0xff]  ;;  %v201_v35 = vld [vmem:[%s4074_s25 + $0x158] sm:$0xff] }
  0x30   : > { %v4386_v17 = vpack.c.bf16 %v195_v10, %v194_v9  ;;  %v698_v56 = vld [vmem:[%s4074_s25 + $0xa] sm:$0xff]  ;;  %v3151_v9 = vld [vmem:[%s4074_s25 + $0x1a0] sm:$0xff] }
  0x35   : > { %3443 = vmatmul.mubr.msk.bf16.gmra.mrb[16].mxu1 %vm271_vm1, %v4166_v48 }
  0x36   : > { %3597 = vmatmul.mubr.msk.bf16.vlgmr.msra.gmra.mrb[0].mxu0 %vm271_vm1, %v4168_v49  ;;  %3446 = vmatprep.mubr.msk.bf16.mxu1 %vm271_vm1, %v4170_v50 }
  0x37   : > { %3629 = vmatpush3.bf16.msra.mxu0 %v1974_v52  ;;  %3600 = vmatprep.mubr.msk.bf16.mxu0 %vm271_vm1, %v4172_v51  ;;  %v4273_v52 = vpack.c.bf16 %v177_v42, %v176_v41  ;;  %v188_v41 = vld [vmem:[%s4074_s25 + $0xc0] sm:$0xff]  ;;  %v189_v42 = vld [vmem:[%s4074_s25 + $0xc8] sm:$0xff] }
  0x38   : > { %3996 = vmatprep.subr.msk.bf16.mxu0 %vm320_vm0, %v4180_v53  ;;  %v196_v53 = vld [vmem:[%s4074_s25 + $0x120] sm:$0xff] }
  0x39   : > { %v4388_v18 = vpack.c.bf16 %v197_v11, %v196_v53  ;;  %v2562_v53 = vsel %vm320_vm0, %v3250_v4, 0 }
  0x3d   : > { %3447 = vmatmul.mubr.msk.bf16.gmra.mrb[20].mxu1 %vm271_vm1, %v4198_v62 }
  0x3e   : > { %3601 = vmatmul.mubr.msk.bf16.gmra.mrb[4].mxu0 %vm271_vm1, %v4200_v63  ;;  %3450 = vmatprep.mubr.msk.bf16.mxu1 %vm271_vm1, %v4202_v0 }
  0x3f   : > { %3604 = vmatprep.mubr.msk.bf16.mxu0 %vm271_vm1, %v4204_v2 }
  0x45   : > { %3451 = vmatmul.mubr.msk.bf16.gmra.mrb[24].mxu1 %vm271_vm1, %v4222_v12 }
  0x46   : > { %3605 = vmatmul.mubr.msk.bf16.gmra.mrb[8].mxu0 %vm271_vm1, %v4224_v13  ;;  %3454 = vmatprep.mubr.msk.bf16.mxu1 %vm271_vm1, %v4226_v14 }
  0x47   : > { %3608 = vmatprep.mubr.msk.bf16.mxu0 %vm271_vm1, %v4228_v16 }
  0x4d   : > { %3455 = vmatmul.mubr.msk.bf16.gmra.mrb[28].mxu1 %vm271_vm1, %v4246_v29 }
  0x4e   : > { %3609 = vmatmul.mubr.msk.bf16.gmra.mrb[12].mxu0 %vm271_vm1, %v4248_v30  ;;  %3460 = vmatprep.mubr.msk.bf16.mxu1 %vm271_vm1, %v204_v31  ;;  %v4330_v31 = vpack.c.bf16 %v3100_v23, %v3099_v22  ;;  %v199_v22 = vld [vmem:[%s4074_s25 + $0x140] sm:$0xff]  ;;  %v200_v23 = vld [vmem:[%s4074_s25 + $0x150] sm:$0xff] }
  0x4f   : > { %3612 = vmatprep.mubr.msk.bf16.mxu0 %vm271_vm1, %v4250_v34  ;;  %v4402_v36 = vpack.c.bf16 %v199_v22, %v198_v20  ;;  %v4404_v37 = vpack.c.bf16 %v201_v35, %v200_v23 }
  0x55   : > { %3461 = vmatmul.mubr.msk.bf16.vlgmr.msra.gmra.mrb[0].mxu1 %vm271_vm1, %v4267_v45 }
  0x56   : > { %3493 = vmatpush3.bf16.msra.mxu1 %v796_v47  ;;  %3613 = vmatmul.mubr.msk.bf16.gmra.mrb[16].mxu0 %vm271_vm1, %v4269_v46  ;;  %v4350_v47 = vpack.c.bf16 %v189_v42, %v188_v41  ;;  %v203_v41 = vld [vmem:[%s4074_s25 + $0x170] sm:$0xff]  ;;  %v697_v42 = vld [vmem:[%s4074_s25 + $0x2] sm:$0xff] }
  0x57   : > { %3464 = vmatprep.mubr.msk.bf16.mxu1 %vm271_vm1, %v4273_v52  ;;  %3616 = vmatprep.mubr.msk.bf16.mxu0 %vm271_vm1, %v4275_v54  ;;  %v4418_v57 = vpack.c.bf16 %v203_v41, %v202_v40  ;;  %v729_v21 = vpack.c.bf16 %v698_v56, %v697_v42 }
  0x58   : > { %3991 = vmatprep.subr.msk.bf16.mxu1 %vm320_vm0, %v4282_v55  ;;  %v3149_v55 = vld [vmem:[%s4074_s25 + $0x188] sm:$0xff] }
  0x5d   : > { %3465 = vmatmul.mubr.msk.bf16.gmra.mrb[4].mxu1 %vm271_vm1, %v4300_v5 }
  0x5e   : > { %3617 = vmatmul.mubr.msk.bf16.gmra.mrb[20].mxu0 %vm271_vm1, %v4302_v6  ;;  %3468 = vmatprep.mubr.msk.bf16.mxu1 %vm271_vm1, %v4304_v7 }
  0x5f   : > { %3620 = vmatprep.mubr.msk.bf16.mxu0 %vm271_vm1, %v4306_v8 }
  0x65   : > { %3469 = vmatmul.mubr.msk.bf16.gmra.mrb[8].mxu1 %vm271_vm1, %v4324_v24 }
  0x66   : > { %3621 = vmatmul.mubr.msk.bf16.gmra.mrb[24].mxu0 %vm271_vm1, %v4326_v25  ;;  %3472 = vmatprep.mubr.msk.bf16.mxu1 %vm271_vm1, %v4328_v28 }
  0x67   : > { %3624 = vmatprep.mubr.msk.bf16.mxu0 %vm271_vm1, %v4330_v31 }
  0x6d   : > { %3473 = vmatmul.mubr.msk.bf16.gmra.mrb[12].mxu1 %vm271_vm1, %v4346_v43 }
  0x6e   : > { %3625 = vmatmul.mubr.msk.bf16.gmra.mrb[28].mxu0 %vm271_vm1, %v4348_v44  ;;  %3476 = vmatprep.mubr.msk.bf16.mxu1 %vm271_vm1, %v4350_v47 }
  0x6f   : > { %3630 = vmatprep.mubr.msk.bf16.mxu0 %vm271_vm1, %v4273_v52 }
  0x75   : > { %3477 = vmatmul.mubr.msk.bf16.gmra.mrb[16].mxu1 %vm271_vm1, %v4364_v59 }
  0x76   : > { %3631 = vmatmul.mubr.msk.bf16.vlgmr.msra.gmra.mrb[0].mxu0 %vm271_vm1, %v4300_v5  ;;  %3480 = vmatprep.mubr.msk.bf16.mxu1 %vm271_vm1, %v4366_v60 }
  0x77   : > { %3663 = vmatpush3.bf16.msra.mxu0 %v2268_v61  ;;  %3634 = vmatprep.mubr.msk.bf16.mxu0 %vm271_vm1, %v4304_v7 }
  0x78   : > { %3997 = vmatprep.subr.msk.bf16.mxu0 %vm320_vm0, %v3250_v4 }
  0x7d   : > { %3481 = vmatmul.mubr.msk.bf16.gmra.mrb[20].mxu1 %vm271_vm1, %v4386_v17 }
  0x7e   : > { %3635 = vmatmul.mubr.msk.bf16.gmra.mrb[4].mxu0 %vm271_vm1, %v4324_v24  ;;  %3484 = vmatprep.mubr.msk.bf16.mxu1 %vm271_vm1, %v4388_v18 }
  0x7f   : > { %3638 = vmatprep.mubr.msk.bf16.mxu0 %vm271_vm1, %v4328_v28 }
  0x85   : > { %3485 = vmatmul.mubr.msk.bf16.gmra.mrb[24].mxu1 %vm271_vm1, %v4402_v36 }
  0x86   : > { %3639 = vmatmul.mubr.msk.bf16.gmra.mrb[8].mxu0 %vm271_vm1, %v4346_v43  ;;  %3488 = vmatprep.mubr.msk.bf16.mxu1 %vm271_vm1, %v4404_v37 }
  0x87   : > { %3642 = vmatprep.mubr.msk.bf16.mxu0 %vm271_vm1, %v4350_v47 }
  0x8d   : > { %3489 = vmatmul.mubr.msk.bf16.gmra.mrb[28].mxu1 %vm271_vm1, %v4418_v57 }
  0x8e   : > { %3643 = vmatmul.mubr.msk.bf16.gmra.mrb[12].mxu0 %vm271_vm1, %v4364_v59  ;;  %3494 = vmatprep.mubr.msk.bf16.mxu1 %vm271_vm1, %v729_v21 }
  0x8f   : > { %3646 = vmatprep.mubr.msk.bf16.mxu0 %vm271_vm1, %v4366_v60 }
  0x95   : > { %3495 = vmatmul.mubr.msk.bf16.vlgmr.msra.gmra.mrb[0].mxu1 %vm271_vm1, %v4148_v39  ;;  %v3148_v39 = vld [vmem:[%s4074_s25 + $0x180] sm:$0xff] }
  0x96   : > { %3527 = vmatpush3.bf16.msra.mxu1 %v1091_v58  ;;  %3647 = vmatmul.mubr.msk.bf16.gmra.mrb[16].mxu0 %vm271_vm1, %v4386_v17  ;;  %v4449_v61 = vpack.c.bf16 %v3149_v55, %v3148_v39 }
  0x97   : > { %3498 = vmatprep.mubr.msk.bf16.mxu1 %vm271_vm1, %v4168_v49  ;;  %3650 = vmatprep.mubr.msk.bf16.mxu0 %vm271_vm1, %v4388_v18 }
  0x98   : > { %3993 = vmatprep.subr.msk.bf16.mxu1 %vm320_vm0, %v4049_v1  ;;  %v3150_v1 = vld [vmem:[%s4074_s25 + $0x198] sm:$0xff] }
  0x99   : > { %v1922_v10 = vpack.c.bf16 %v3151_v9, %v3150_v1 }
  0x9d   : > { %3499 = vmatmul.mubr.msk.bf16.gmra.mrb[4].mxu1 %vm271_vm1, %v4172_v51 }
  0x9e   : > { %3651 = vmatmul.mubr.msk.bf16.gmra.mrb[20].mxu0 %vm271_vm1, %v4402_v36  ;;  %3502 = vmatprep.mubr.msk.bf16.mxu1 %vm271_vm1, %v4200_v63 }
  0x9f   : > { %3654 = vmatprep.mubr.msk.bf16.mxu0 %vm271_vm1, %v4404_v37 }
  0xa5   : > { %3503 = vmatmul.mubr.msk.bf16.gmra.mrb[8].mxu1 %vm271_vm1, %v4204_v2 }
  0xa6   : > { %3655 = vmatmul.mubr.msk.bf16.gmra.mrb[24].mxu0 %vm271_vm1, %v4418_v57  ;;  %3506 = vmatprep.mubr.msk.bf16.mxu1 %vm271_vm1, %v4224_v13 }
  0xa7   : > { %3658 = vmatprep.mubr.msk.bf16.mxu0 %vm271_vm1, %v4449_v61 }
  0xad   : > { %3507 = vmatmul.mubr.msk.bf16.gmra.mrb[12].mxu1 %vm271_vm1, %v4228_v16 }
  0xae   : > { %3659 = vmatmul.mubr.msk.bf16.gmra.mrb[28].mxu0 %vm271_vm1, %v1922_v10  ;;  %3510 = vmatprep.mubr.msk.bf16.mxu1 %vm271_vm1, %v4248_v30 }
  0xaf   : > { %3664 = vmatprep.mubr.msk.bf16.mxu0 %vm271_vm1, %v4083_v15  ;;  %v3198_v15 = vld [vmem:[%s4074_s25 + $0x189] sm:$0xff] }
  0xb5   : > { %3511 = vmatmul.mubr.msk.bf16.gmra.mrb[16].mxu1 %vm271_vm1, %v4250_v34 }
  0xb6   : > { %3665 = vmatmul.mubr.msk.bf16.vlgmr.msra.gmra.mrb[0].mxu0 %vm271_vm1, %v4089_v19  ;;  %3514 = vmatprep.mubr.msk.bf16.mxu1 %vm271_vm1, %v4269_v46 }
  0xb7   : > { %3697 = vmatpush3.bf16.msra.mxu0 %v2562_v53  ;;  %3668 = vmatprep.mubr.msk.bf16.mxu0 %vm271_vm1, %v4114_v26  ;;  %v3199_v26 = vld [vmem:[%s4074_s25 + $0x199] sm:$0xff] }
  0xbd   : > { %3515 = vmatmul.mubr.msk.bf16.gmra.mrb[20].mxu1 %vm271_vm1, %v4275_v54 }
  0xbe   : > { %3669 = vmatmul.mubr.msk.bf16.gmra.mrb[4].mxu0 %vm271_vm1, %v4116_v27  ;;  %3518 = vmatprep.mubr.msk.bf16.mxu1 %vm271_vm1, %v4302_v6  ;;  %v3200_v27 = vld [vmem:[%s4074_s25 + $0x1a1] sm:$0xff] }
  0xbf   : > { %3672 = vmatprep.mubr.msk.bf16.mxu0 %vm271_vm1, %v4130_v32  ;;  %v2216_v32 = vpack.c.bf16 %v3200_v27, %v3199_v26 }
  0xc5   : > { %3519 = vmatmul.mubr.msk.bf16.gmra.mrb[24].mxu1 %vm271_vm1, %v4306_v8 }
  0xc6   : > { %3673 = vmatmul.mubr.msk.bf16.gmra.mrb[8].mxu0 %vm271_vm1, %v4132_v33  ;;  %3522 = vmatprep.mubr.msk.bf16.mxu1 %vm271_vm1, %v4326_v25  ;;  %v3248_v33 = vld [vmem:[%s4074_s25 + $0x19a] sm:$0xff] }
  0xc7   : > { %3676 = vmatprep.mubr.msk.bf16.mxu0 %vm271_vm1, %v4146_v38  ;;  %v3249_v38 = vld [vmem:[%s4074_s25 + $0x1a2] sm:$0xff] }
  0xcd   : > { %3523 = vmatmul.mubr.msk.bf16.gmra.mrb[28].mxu1 %vm271_vm1, %v4330_v31 }
  0xce   : > { %3677 = vmatmul.mubr.msk.bf16.gmra.mrb[12].mxu0 %vm271_vm1, %v4166_v48  ;;  %3528 = vmatprep.mubr.msk.bf16.mxu1 %vm271_vm1, %v4267_v45 }
  0xcf   : > { %3680 = vmatprep.mubr.msk.bf16.mxu0 %vm271_vm1, %v4170_v50 }
  0xd5   : > { %3529 = vmatmul.mubr.msk.bf16.vlgmr.msra.gmra.mrb[0].mxu1 %vm271_vm1, %v4273_v52 }
  0xd6   : > { %3731 = vmatpush3.bf16.msra.mxu1 %v4057_v3  ;;  %3681 = vmatmul.mubr.msk.bf16.gmra.mrb[16].mxu0 %vm271_vm1, %v4198_v62  ;;  %v3197_v3 = vld [vmem:[%s4074_s25 + $0x181] sm:$0xff] }
  0xd7   : > { %3532 = vmatprep.mubr.msk.bf16.mxu1 %vm271_vm1, %v4300_v5  ;;  %3684 = vmatprep.mubr.msk.bf16.mxu0 %vm271_vm1, %v4202_v0  ;;  %v2215_v19 = vpack.c.bf16 %v3198_v15, %v3197_v3 }
  0xdd   : > { %3533 = vmatmul.mubr.msk.bf16.gmra.mrb[4].mxu1 %vm271_vm1, %v4304_v7 }
  0xde   : > { %3685 = vmatmul.mubr.msk.bf16.gmra.mrb[20].mxu0 %vm271_vm1, %v4222_v12  ;;  %3536 = vmatprep.mubr.msk.bf16.mxu1 %vm271_vm1, %v4324_v24 }
  0xdf   : > { %3688 = vmatprep.mubr.msk.bf16.mxu0 %vm271_vm1, %v4226_v14 }
  0xe5   : > { %3537 = vmatmul.mubr.msk.bf16.gmra.mrb[8].mxu1 %vm271_vm1, %v4328_v28 }
  0xe6   : > { %3689 = vmatmul.mubr.msk.bf16.gmra.mrb[24].mxu0 %vm271_vm1, %v4246_v29  ;;  %3540 = vmatprep.mubr.msk.bf16.mxu1 %vm271_vm1, %v4346_v43 }
  0xe7   : > { %3692 = vmatprep.mubr.msk.bf16.mxu0 %vm271_vm1, %v2215_v19 }
  0xed   : > { %3541 = vmatmul.mubr.msk.bf16.gmra.mrb[12].mxu1 %vm271_vm1, %v4350_v47 }
  0xee   : > { %3693 = vmatmul.mubr.msk.bf16.gmra.mrb[28].mxu0 %vm271_vm1, %v2216_v32  ;;  %3544 = vmatprep.mubr.msk.bf16.mxu1 %vm271_vm1, %v4364_v59 }
  0xef   : > { %3698 = vmatprep.mubr.msk.bf16.mxu0 %vm271_vm1, %v4168_v49 }
  0xf5   : > { %3545 = vmatmul.mubr.msk.bf16.gmra.mrb[16].mxu1 %vm271_vm1, %v4366_v60 }
  0xf6   : > { %3699 = vmatmul.mubr.msk.bf16.vlgmr.msra.gmra.mrb[0].mxu0 %vm271_vm1, %v4172_v51  ;;  %3548 = vmatprep.mubr.msk.bf16.mxu1 %vm271_vm1, %v4386_v17 }
  0xf7   : > { %3702 = vmatprep.mubr.msk.bf16.mxu0 %vm271_vm1, %v4200_v63 }
  0xfd   : > { %3549 = vmatmul.mubr.msk.bf16.gmra.mrb[20].mxu1 %vm271_vm1, %v4388_v18 }
  0xfe   : > { %3703 = vmatmul.mubr.msk.bf16.gmra.mrb[4].mxu0 %vm271_vm1, %v4204_v2  ;;  %3552 = vmatprep.mubr.msk.bf16.mxu1 %vm271_vm1, %v4402_v36 }
  0xff   : > { %3706 = vmatprep.mubr.msk.bf16.mxu0 %vm271_vm1, %v4224_v13 }
 0x105   : > { %3553 = vmatmul.mubr.msk.bf16.gmra.mrb[24].mxu1 %vm271_vm1, %v4404_v37 }
 0x106   : > { %3707 = vmatmul.mubr.msk.bf16.gmra.mrb[8].mxu0 %vm271_vm1, %v4228_v16  ;;  %3556 = vmatprep.mubr.msk.bf16.mxu1 %vm271_vm1, %v4418_v57 }
 0x107   : > { %3710 = vmatprep.mubr.msk.bf16.mxu0 %vm271_vm1, %v4248_v30 }
 0x10d   : > { %3557 = vmatmul.mubr.msk.bf16.gmra.mrb[28].mxu1 %vm271_vm1, %v4449_v61 }
 0x10e   : > { %3711 = vmatmul.mubr.msk.bf16.gmra.mrb[12].mxu0 %vm271_vm1, %v4250_v34  ;;  %3578 = vmatprep.mubr.msk.bf16.mxu1 %vm271_vm1, %v4166_v48  ;;  %v2510_v48 = vpack.c.bf16 %v3249_v38, %v3248_v33 }
 0x10f   : > { %3714 = vmatprep.mubr.msk.bf16.mxu0 %vm271_vm1, %v4269_v46 }
 0x115   : > { %3579 = vmatmul.mubr.msk.bf16.vlgmr.msra.gmra.mrb[16].mxu1 %vm271_vm1, %v4170_v50 }
 0x116   : > { %3715 = vmatmul.mubr.msk.bf16.gmra.mrb[16].mxu0 %vm271_vm1, %v4275_v54  ;;  %3582 = vmatprep.mubr.msk.bf16.mxu1 %vm271_vm1, %v4198_v62  ;;  %v4607_v54 = vld [vmem:[%s4688_s2] ss:$0 sm:$0xff] }
 0x117   : > { %3718 = vmatprep.mubr.msk.bf16.mxu0 %vm271_vm1, %v4302_v6 }
 0x11d   : > { %3583 = vmatmul.mubr.msk.bf16.gmra.mrb[20].mxu1 %vm271_vm1, %v4202_v0 }
 0x11e   : > { %3719 = vmatmul.mubr.msk.bf16.gmra.mrb[20].mxu0 %vm271_vm1, %v4306_v8  ;;  %3586 = vmatprep.mubr.msk.bf16.mxu1 %vm271_vm1, %v4222_v12 }
 0x11f   : > { %3722 = vmatprep.mubr.msk.bf16.mxu0 %vm271_vm1, %v4326_v25 }
 0x125   : > { %3587 = vmatmul.mubr.msk.bf16.gmra.mrb[24].mxu1 %vm271_vm1, %v4226_v14 }
 0x126   : > { %3723 = vmatmul.mubr.msk.bf16.gmra.mrb[24].mxu0 %vm271_vm1, %v4330_v31  ;;  %3590 = vmatprep.mubr.msk.bf16.mxu1 %vm271_vm1, %v4246_v29 }
 0x127   : > { %3726 = vmatprep.mubr.msk.bf16.mxu0 %vm271_vm1, %v4348_v44 }
 0x12d   : > { %3591 = vmatmul.mubr.msk.bf16.gmra.mrb[28].mxu1 %vm271_vm1, %v2215_v19 }
 0x12e   : > { %3727 = vmatmul.mubr.msk.bf16.gmra.mrb[28].mxu0 %vm271_vm1, %v2510_v48 }
 0x1a8   : > { %v3530_v49 = vpop.f32.mrb[0].mxu1 }
 0x1a9   : > { %v1127_v50 = vpop.f32.mrb[1].mxu1 }
 0x1aa   : > { %v3531_v51 = vpop.f32.mrb[2].mxu1 }
 0x1ab   : > { %v1130_v62 = vpop.f32.mrb[3].mxu1 }
 0x1b0   : > { %v3534_v63 = vpop.f32.mrb[4].mxu1 }
 0x1b1   : > { %v1143_v0 = vpop.f32.mrb[5].mxu1 }
 0x1b2   : > { %v3535_v2 = vpop.f32.mrb[6].mxu1 }
 0x1b3   : > { %v1146_v12 = vpop.f32.mrb[7].mxu1 }
 0x1b8   : > { %v3538_v13 = vpop.f32.mrb[8].mxu1 }
 0x1b9   : > { %v1159_v14 = vpop.f32.mrb[9].mxu1 }
 0x1ba   : > { %v3539_v16 = vpop.f32.mrb[10].mxu1 }
 0x1bb   : > { %v1162_v29 = vpop.f32.mrb[11].mxu1 }
 0x1c0   : > { %v4596_v30 = vpop.f32.mrb[12].mxu1 }
 0x1c1   : > { %v4598_v34 = vpop.f32.mrb[13].mxu1 }
 0x1c2   : > { %v4600_v45 = vpop.f32.mrb[14].mxu1 }
 0x1c3   : > { %v4602_v46 = vpop.f32.mrb[15].mxu1 }
 0x1c9   : > { %v3700_v52 = vpop.f32.mrb[0].mxu0 }
 0x1ca   : > { %v3732_v5 = vadd.f32 %v3700_v52, %v3530_v49  ;;  %v2598_v6 = vpop.f32.mrb[1].mxu0 }
 0x1cb   : > { %v3733_v7 = vadd.f32 %v2598_v6, %v1127_v50  ;;  %v3701_v8 = vpop.f32.mrb[2].mxu0 }
 0x1cc   : > { %v2766_v24 = vadd.f32 %v3732_v5, %v4607_v54  ;;  %v3734_v25 = vadd.f32 %v3701_v8, %v3531_v51  ;;  %v2601_v28 = vpop.f32.mrb[3].mxu0 }
 0x1cd   : > { %v2764_v31 = vadd.f32 %v3733_v7, %v4607_v54  ;;  %v3735_v43 = vadd.f32 %v2601_v28, %v1130_v62 }
 0x1ce   : > { %v2798_v44 = vmax.f32 %v2766_v24, 0.0  ;;  %v2767_v47 = vadd.f32 %v3734_v25, %v4607_v54 }
 0x1cf   : > { %v2796_v59 = vmax.f32 %v2764_v31, 0.0  ;;  %v2765_v60 = vadd.f32 %v3735_v43, %v4607_v54 }
 0x1d0   : > { %2830 = vst [vmem:[%s4614_s16 + $0x10] sm:$0xff] %v2798_v44  ;;  %v2799_v4 = vmax.f32 %v2767_v47, 0.0 }
 0x1d1   : > { %2828 = vst [vmem:[%s4614_s16] sm:$0xff] %v2796_v59  ;;  %v2797_v11 = vmax.f32 %v2765_v60, 0.0  ;;  %v3704_v17 = vpop.f32.mrb[4].mxu0 }
 0x1d2   : > { %2831 = vst [vmem:[%s4614_s16 + $0x18] sm:$0xff] %v2799_v4  ;;  %v3736_v18 = vadd.f32 %v3704_v17, %v3534_v63  ;;  %v2614_v20 = vpop.f32.mrb[5].mxu0 }
 0x1d3   : > { %2829 = vst [vmem:[%s4614_s16 + $0x8] sm:$0xff] %v2797_v11  ;;  %v3737_v22 = vadd.f32 %v2614_v20, %v1143_v0  ;;  %v3705_v23 = vpop.f32.mrb[6].mxu0 }
 0x1d4   : > { %v2770_v35 = vadd.f32 %v3736_v18, %v4607_v54  ;;  %v3738_v36 = vadd.f32 %v3705_v23, %v3535_v2  ;;  %v2617_v37 = vpop.f32.mrb[7].mxu0 }
 0x1d5   : > { %v2768_v40 = vadd.f32 %v3737_v22, %v4607_v54  ;;  %v3739_v41 = vadd.f32 %v2617_v37, %v1146_v12 }
 0x1d6   : > { %v2802_v42 = vmax.f32 %v2770_v35, 0.0  ;;  %v2771_v56 = vadd.f32 %v3738_v36, %v4607_v54 }
 0x1d7   : > { %v2800_v57 = vmax.f32 %v2768_v40, 0.0  ;;  %v2769_v21 = vadd.f32 %v3739_v41, %v4607_v54 }
 0x1d8   : > { %2834 = vst [vmem:[%s4614_s16 + $0x30] sm:$0xff] %v2802_v42  ;;  %v2803_v58 = vmax.f32 %v2771_v56, 0.0 }
 0x1d9   : > { %2832 = vst [vmem:[%s4614_s16 + $0x20] sm:$0xff] %v2800_v57  ;;  %v2801_v39 = vmax.f32 %v2769_v21, 0.0  ;;  %v3708_v55 = vpop.f32.mrb[8].mxu0 }
 0x1da   : > { %2835 = vst [vmem:[%s4614_s16 + $0x38] sm:$0xff] %v2803_v58  ;;  %v3740_v61 = vadd.f32 %v3708_v55, %v3538_v13  ;;  %v2630_v1 = vpop.f32.mrb[9].mxu0 }
 0x1db   : > { %2833 = vst [vmem:[%s4614_s16 + $0x28] sm:$0xff] %v2801_v39  ;;  %v3741_v9 = vadd.f32 %v2630_v1, %v1159_v14  ;;  %v3709_v10 = vpop.f32.mrb[10].mxu0 }
 0x1dc   : > { %v2774_v53 = vadd.f32 %v3740_v61, %v4607_v54  ;;  %v3742_v3 = vadd.f32 %v3709_v10, %v3539_v16  ;;  %v2633_v15 = vpop.f32.mrb[11].mxu0 }
 0x1dd   : > { %v2772_v19 = vadd.f32 %v3741_v9, %v4607_v54  ;;  %v3743_v26 = vadd.f32 %v2633_v15, %v1162_v29 }
 0x1de   : > { %v2806_v27 = vmax.f32 %v2774_v53, 0.0  ;;  %v2775_v32 = vadd.f32 %v3742_v3, %v4607_v54 }
 0x1df   : > { %v2804_v33 = vmax.f32 %v2772_v19, 0.0  ;;  %v2773_v38 = vadd.f32 %v3743_v26, %v4607_v54 }
 0x1e0   : > { %2838 = vst [vmem:[%s4614_s16 + $0x50] sm:$0xff] %v2806_v27  ;;  %v2807_v48 = vmax.f32 %v2775_v32, 0.0 }
 0x1e1   : > { %2836 = vst [vmem:[%s4614_s16 + $0x40] sm:$0xff] %v2804_v33  ;;  %v2805_v49 = vmax.f32 %v2773_v38, 0.0  ;;  %v3712_v50 = vpop.f32.mrb[12].mxu0 }
 0x1e2   : > { %2839 = vst [vmem:[%s4614_s16 + $0x58] sm:$0xff] %v2807_v48  ;;  %v3744_v51 = vadd.f32 %v3712_v50, %v4596_v30  ;;  %v2646_v62 = vpop.f32.mrb[13].mxu0 }
 0x1e3   : > { %2837 = vst [vmem:[%s4614_s16 + $0x48] sm:$0xff] %v2805_v49  ;;  %v3745_v63 = vadd.f32 %v2646_v62, %v4598_v34  ;;  %v3713_v0 = vpop.f32.mrb[14].mxu0 }
 0x1e4   : > { %v2778_v2 = vadd.f32 %v3744_v51, %v4607_v54  ;;  %v3746_v12 = vadd.f32 %v3713_v0, %v4600_v45  ;;  %v2649_v13 = vpop.f32.mrb[15].mxu0 }
 0x1e5   : > { %v2776_v14 = vadd.f32 %v3745_v63, %v4607_v54  ;;  %v3747_v16 = vadd.f32 %v2649_v13, %v4602_v46 }
 0x1e6   : > { %v2810_v29 = vmax.f32 %v2778_v2, 0.0  ;;  %v2779_v30 = vadd.f32 %v3746_v12, %v4607_v54 }
 0x1e7   : > { %v2808_v52 = vmax.f32 %v2776_v14, 0.0  ;;  %v2777_v5 = vadd.f32 %v3747_v16, %v4607_v54 }
 0x1e8   : > { %2842 = vst [vmem:[%s4614_s16 + $0x70] sm:$0xff] %v2810_v29  ;;  %v2811_v34 = vmax.f32 %v2779_v30, 0.0  ;;  %v3580_v6 = vpop.f32.mrb[16].mxu1 }
 0x1e9   : > { %2840 = vst [vmem:[%s4614_s16 + $0x60] sm:$0xff] %v2808_v52  ;;  %v2809_v7 = vmax.f32 %v2777_v5, 0.0  ;;  %v3716_v8 = vpop.f32.mrb[16].mxu0  ;;  %v1485_v24 = vpop.f32.mrb[17].mxu1 }
 0x1ea   : > { %2843 = vst [vmem:[%s4614_s16 + $0x78] sm:$0xff] %v2811_v34  ;;  %v3748_v45 = vadd.f32 %v3716_v8, %v3580_v6  ;;  %v2662_v25 = vpop.f32.mrb[17].mxu0  ;;  %v3581_v28 = vpop.f32.mrb[18].mxu1 }
 0x1eb   : > { %2841 = vst [vmem:[%s4614_s16 + $0x68] sm:$0xff] %v2809_v7  ;;  %v3749_v46 = vadd.f32 %v2662_v25, %v1485_v24  ;;  %v3717_v31 = vpop.f32.mrb[18].mxu0  ;;  %v1488_v43 = vpop.f32.mrb[19].mxu1 }
 0x1ec   : > { %v2782_v44 = vadd.f32 %v3748_v45, %v4607_v54  ;;  %v3750_v47 = vadd.f32 %v3717_v31, %v3581_v28  ;;  %v2665_v59 = vpop.f32.mrb[19].mxu0 }
 0x1ed   : > { %v2780_v60 = vadd.f32 %v3749_v46, %v4607_v54  ;;  %v3751_v4 = vadd.f32 %v2665_v59, %v1488_v43 }
 0x1ee   : > { %v2814_v11 = vmax.f32 %v2782_v44, 0.0  ;;  %v2783_v17 = vadd.f32 %v3750_v47, %v4607_v54 }
 0x1ef   : > { %v2812_v18 = vmax.f32 %v2780_v60, 0.0  ;;  %v2781_v20 = vadd.f32 %v3751_v4, %v4607_v54 }
 0x1f0   : > { %2846 = vst [vmem:[%s4614_s16 + $0x90] sm:$0xff] %v2814_v11  ;;  %v2815_v22 = vmax.f32 %v2783_v17, 0.0  ;;  %v3584_v23 = vpop.f32.mrb[20].mxu1 }
 0x1f1   : > { %2844 = vst [vmem:[%s4614_s16 + $0x80] sm:$0xff] %v2812_v18  ;;  %v2813_v35 = vmax.f32 %v2781_v20, 0.0  ;;  %v3720_v36 = vpop.f32.mrb[20].mxu0  ;;  %v1501_v37 = vpop.f32.mrb[21].mxu1 }
 0x1f2   : > { %2847 = vst [vmem:[%s4614_s16 + $0x98] sm:$0xff] %v2815_v22  ;;  %v3752_v40 = vadd.f32 %v3720_v36, %v3584_v23  ;;  %v2678_v41 = vpop.f32.mrb[21].mxu0  ;;  %v3585_v42 = vpop.f32.mrb[22].mxu1 }
 0x1f3   : > { %2845 = vst [vmem:[%s4614_s16 + $0x88] sm:$0xff] %v2813_v35  ;;  %v3753_v56 = vadd.f32 %v2678_v41, %v1501_v37  ;;  %v3721_v57 = vpop.f32.mrb[22].mxu0  ;;  %v1504_v21 = vpop.f32.mrb[23].mxu1 }
 0x1f4   : > { %v2786_v58 = vadd.f32 %v3752_v40, %v4607_v54  ;;  %v3754_v39 = vadd.f32 %v3721_v57, %v3585_v42  ;;  %v2681_v55 = vpop.f32.mrb[23].mxu0 }
 0x1f5   : > { %v2784_v61 = vadd.f32 %v3753_v56, %v4607_v54  ;;  %v3755_v1 = vadd.f32 %v2681_v55, %v1504_v21 }
 0x1f6   : > { %v2818_v9 = vmax.f32 %v2786_v58, 0.0  ;;  %v2787_v10 = vadd.f32 %v3754_v39, %v4607_v54 }
 0x1f7   : > { %v2816_v53 = vmax.f32 %v2784_v61, 0.0  ;;  %v2785_v3 = vadd.f32 %v3755_v1, %v4607_v54 }
 0x1f8   : > { %2850 = vst [vmem:[%s4614_s16 + $0xb0] sm:$0xff] %v2818_v9  ;;  %v2819_v15 = vmax.f32 %v2787_v10, 0.0  ;;  %v3588_v19 = vpop.f32.mrb[24].mxu1 }
 0x1f9   : > { %2848 = vst [vmem:[%s4614_s16 + $0xa0] sm:$0xff] %v2816_v53  ;;  %v2817_v26 = vmax.f32 %v2785_v3, 0.0  ;;  %v3724_v27 = vpop.f32.mrb[24].mxu0  ;;  %v1517_v32 = vpop.f32.mrb[25].mxu1 }
 0x1fa   : > { %2851 = vst [vmem:[%s4614_s16 + $0xb8] sm:$0xff] %v2819_v15  ;;  %v3756_v33 = vadd.f32 %v3724_v27, %v3588_v19  ;;  %v2694_v38 = vpop.f32.mrb[25].mxu0  ;;  %v3589_v48 = vpop.f32.mrb[26].mxu1 }
 0x1fb   : > { %2849 = vst [vmem:[%s4614_s16 + $0xa8] sm:$0xff] %v2817_v26  ;;  %v3757_v49 = vadd.f32 %v2694_v38, %v1517_v32  ;;  %v3725_v50 = vpop.f32.mrb[26].mxu0  ;;  %v1520_v51 = vpop.f32.mrb[27].mxu1 }
 0x1fc   : > { %v2790_v62 = vadd.f32 %v3756_v33, %v4607_v54  ;;  %v3758_v63 = vadd.f32 %v3725_v50, %v3589_v48  ;;  %v2697_v0 = vpop.f32.mrb[27].mxu0 }
 0x1fd   : > { %v2788_v2 = vadd.f32 %v3757_v49, %v4607_v54  ;;  %v3759_v12 = vadd.f32 %v2697_v0, %v1520_v51 }
 0x1fe   : > { %v2822_v13 = vmax.f32 %v2790_v62, 0.0  ;;  %v2791_v14 = vadd.f32 %v3758_v63, %v4607_v54 }
 0x1ff   : > { %v2820_v16 = vmax.f32 %v2788_v2, 0.0  ;;  %v2789_v29 = vadd.f32 %v3759_v12, %v4607_v54 }
 0x200   : > { %2854 = vst [vmem:[%s4614_s16 + $0xd0] sm:$0xff] %v2822_v13  ;;  %v2823_v30 = vmax.f32 %v2791_v14, 0.0  ;;  %v3592_v52 = vpop.f32.mrb[28].mxu1 }
 0x201   : > { %2852 = vst [vmem:[%s4614_s16 + $0xc0] sm:$0xff] %v2820_v16  ;;  %v2821_v5 = vmax.f32 %v2789_v29, 0.0  ;;  %v3728_v34 = vpop.f32.mrb[28].mxu0  ;;  %v1533_v6 = vpop.f32.mrb[29].mxu1 }
 0x202   : > { %2855 = vst [vmem:[%s4614_s16 + $0xd8] sm:$0xff] %v2823_v30  ;;  %v3760_v7 = vadd.f32 %v3728_v34, %v3592_v52  ;;  %v2710_v8 = vpop.f32.mrb[29].mxu0  ;;  %v3593_v24 = vpop.f32.mrb[30].mxu1 }
 0x203   : > { %2853 = vst [vmem:[%s4614_s16 + $0xc8] sm:$0xff] %v2821_v5  ;;  %v3761_v45 = vadd.f32 %v2710_v8, %v1533_v6  ;;  %v3729_v25 = vpop.f32.mrb[30].mxu0  ;;  %v1536_v28 = vpop.f32.mrb[31].mxu1 }
 0x204   : > { %v2794_v46 = vadd.f32 %v3760_v7, %v4607_v54  ;;  %v3762_v31 = vadd.f32 %v3729_v25, %v3593_v24  ;;  %v2713_v43 = vpop.f32.mrb[31].mxu0 }
 0x205   : > { %v2792_v44 = vadd.f32 %v3761_v45, %v4607_v54  ;;  %v3763_v47 = vadd.f32 %v2713_v43, %v1536_v28 }
 0x206   : > { %v2826_v59 = vmax.f32 %v2794_v46, 0.0  ;;  %v2795_v60 = vadd.f32 %v3762_v31, %v4607_v54 }
 0x207   : > { %v2824_v4 = vmax.f32 %v2792_v44, 0.0  ;;  %v2793_v11 = vadd.f32 %v3763_v47, %v4607_v54 }
 0x208   : > { %2858 = vst [vmem:[%s4614_s16 + $0xf0] sm:$0xff] %v2826_v59  ;;  %v2827_v17 = vmax.f32 %v2795_v60, 0.0 }
 0x209   : > { %2856 = vst [vmem:[%s4614_s16 + $0xe0] sm:$0xff] %v2824_v4  ;;  %v2825_v18 = vmax.f32 %v2793_v11, 0.0 }
 0x20a   : > { %2859 = vst [vmem:[%s4614_s16 + $0xf8] sm:$0xff] %v2827_v17 }
 0x20b   : > { %2857 = vst [vmem:[%s4614_s16 + $0xe8] sm:$0xff] %v2825_v18 }
 0x20c PF: > { %s13_s12 = sadd.s32 1, %s4013_s12  }
 0x20d   : > { %p10_p4 = scmp.ge.s32.totalorder %s13_s12, 4  }
 0x20f   :  { %12 = sbr.rel (!%p10_p4) target bundleno = 1 (0x1), region = 72 }

</bundles_post_ra>
